<compile_context>
chip_gen: v7x
topology: tpu7x:2x2x1
jax: 0.10.0
libtpu: 0.0.40
codegen_flags: <defaults>
</compile_context>

<pallas_src>
import jax
import jax.numpy as jnp
from jax.experimental import pallas as pl
from jax.experimental.pallas import tpu as pltpu


def _round_up(n, m):
    return (n + m - 1) // m * m


def _cdiv(a, b):
    return (a + b - 1) // b


def _make_mlp_kernel(n_layers):
    """Fused N-layer affine chain + sigmoid for one batch tile.
    Matmuls run on the MXU with f32 accumulation; bias add + sigmoid run in
    f32 on the VPU/EUP."""
    def kernel(*refs):
        x_ref, o_ref = refs[0], refs[-1]
        h = x_ref[...]
        for l in range(n_layers):
            w_ref = refs[1 + 2 * l]
            b_ref = refs[2 + 2 * l]
            h = jnp.dot(h.astype(w_ref.dtype), w_ref[...],
                        preferred_element_type=jnp.float32) + b_ref[...]
        o_ref[...] = jax.nn.sigmoid(h).astype(o_ref.dtype)
    return kernel


def collapse_generator_params(params):
    """Fold the 4 affine layers into a single (W_eff, b_eff).

    Exact in real arithmetic because the reference module has no activations
    between its Linear layers.  Call ONCE at parameter-load time (or under
    jit where it constant-folds); do NOT recompute per forward call.
    """
    (w1, b1), (w2, b2), (w3, b3), (w4, b4) = params
    w_eff = w1 @ w2 @ w3 @ w4                              # [g_id, g_od]
    b_eff = ((b1 @ w2 + b2) @ w3 + b3) @ w4 + b4           # [1,   g_od]
    return [(w_eff, b_eff)]


def generator_forward(x, layers, *, batch_tile=512, use_bf16=False,
                      out_dtype=jnp.float32, min_grid_steps=2):
    """x: [B, g_input_dim] f32.  layers: list of (W [in,out], b [1,out]) pairs
    (either the 4 original layers or the 1 collapsed layer).
    Returns sigmoid(chain of affine layers)(x): [B, g_output_dim] in out_dtype.
    """
    layers = [(w, b) for (w, b) in layers]
    B, g_id = x.shape
    g_od = layers[-1][0].shape[1]

    # --- lane padding: first-layer K and last-layer N to multiples of 128 ---
    k_pad = _round_up(g_id, 128)
    n_pad = _round_up(g_od, 128)
    x_p = jnp.pad(x, ((0, 0), (0, k_pad - g_id))) if k_pad != g_id else x
    if k_pad != g_id:
        w0, b0 = layers[0]
        layers[0] = (jnp.pad(w0, ((0, k_pad - g_id), (0, 0))), b0)
    if n_pad != g_od:
        wl, bl = layers[-1]
        layers[-1] = (jnp.pad(wl, ((0, 0), (0, n_pad - g_od))),
                      jnp.pad(bl, ((0, 0), (0, n_pad - g_od))))

    # --- adaptive batch tiling ---
    # steps = ceil(B / batch_tile) but at least 2 when worthwhile (v7x has 2
    # TensorCores; a 1-step grid leaves one idle).  bt is then balanced across
    # the steps so batch padding is < 8 rows per tile (no ~2x padded work).
    steps = _cdiv(B, max(8, batch_tile))
    if B >= 16:
        steps = max(steps, min_grid_steps)
    bt = _round_up(_cdiv(B, steps), 8)
    b_pad = _round_up(B, bt)
    if b_pad != B:
        x_p = jnp.pad(x_p, ((0, b_pad - B), (0, 0)))
    grid = b_pad // bt

    # --- optional bf16 MXU operands (f32 accumulation, f32 bias/sigmoid) ---
    if use_bf16:
        x_p = x_p.astype(jnp.bfloat16)
        layers = [(w.astype(jnp.bfloat16), b) for (w, b) in layers]

    flat_args = [x_p]
    in_specs = [pl.BlockSpec((bt, k_pad), lambda i: (i, 0))]
    for (w, b) in layers:
        flat_args += [w, b]
        # Grid-invariant blocks (index_map always (0,0)): DMA'd once and
        # single-buffered -> no wasted second VMEM copy.
        in_specs += [
            pl.BlockSpec(w.shape, lambda i: (0, 0),
                         pipeline_mode=pl.Buffered(1)),
            pl.BlockSpec(b.shape, lambda i: (0, 0),
                         pipeline_mode=pl.Buffered(1)),
        ]

    # Advisory cost estimate so XLA schedules the custom call sensibly.
    flops = 2 * b_pad * sum(w.shape[0] * w.shape[1] for (w, _) in layers)
    transcendentals = b_pad * n_pad  # sigmoid
    bytes_accessed = (
        x_p.size * x_p.dtype.itemsize
        + sum(w.size * w.dtype.itemsize + b.size * b.dtype.itemsize
              for (w, b) in layers)
        + b_pad * n_pad * jnp.dtype(out_dtype).itemsize)

    out = pl.pallas_call(
        _make_mlp_kernel(len(layers)),
        out_shape=jax.ShapeDtypeStruct((b_pad, n_pad), out_dtype),
        grid_spec=pltpu.PrefetchScalarGridSpec(
            num_scalar_prefetch=0,
            grid=(grid,),
            in_specs=in_specs,
            out_specs=pl.BlockSpec((bt, n_pad), lambda i: (i, 0)),
        ),
        compiler_params=pltpu.CompilerParams(
            dimension_semantics=("parallel",)),
        cost_estimate=pl.CostEstimate(
            flops=flops, transcendentals=transcendentals,
            bytes_accessed=bytes_accessed),
    )(*flat_args)

    # Note: mem-bound deployments may prefer out_dtype=bf16 and/or keeping the
    # padded (b_pad, n_pad) slab to avoid this XLA slice-copy; default keeps
    # the reference module's f32 [B, g_od] semantics.
    return out[:B, :g_od]


def init_generator_params(key, g_input_dim, g_output_dim):
    """Init mimicking PyTorch nn.Linear defaults (U[-1/sqrt(in), 1/sqrt(in)]).
    Weights stored [in, out]; biases stored [1, out]."""
    dims = [(g_input_dim, 256), (256, 512), (512, 1024), (1024, g_output_dim)]
    params = []
    for (din, dout) in dims:
        key, kw, kb = jax.random.split(key, 3)
        bound = 1.0 / jnp.sqrt(jnp.float32(din))
        w = jax.random.uniform(kw, (din, dout), jnp.float32, -bound, bound)
        b = jax.random.uniform(kb, (1, dout), jnp.float32, -bound, bound)
        params.append((w, b))
    return params


def _reference(x, params):
    (w1, b1), (w2, b2), (w3, b3), (w4, b4) = params
    h = x @ w1 + b1
    h = h @ w2 + b2
    h = h @ w3 + b3
    h = h @ w4 + b4
    return jax.nn.sigmoid(h)


if __name__ == "__main__":
    g_input_dim = 64
    g_output_dim = 200   # not a multiple of 128 -> exercises lane padding
    batch = 16           # small -> exercises adaptive tile + 2-step grid

    key = jax.random.PRNGKey(0)
    key, kx = jax.random.split(key)
    x = jax.random.normal(kx, (batch, g_input_dim), jnp.float32)
    params = init_generator_params(key, g_input_dim, g_output_dim)

    ref = _reference(x, params)

    # 1) PRIMARY path: collapsed single matmul + sigmoid.  The fold is done
    #    once here (param-load time), NOT inside generator_forward.
    layers_collapsed = collapse_generator_params(params)
    out_c = jax.block_until_ready(generator_forward(x, layers_collapsed))
    assert out_c.shape == (batch, g_output_dim)
    assert jnp.allclose(out_c, ref, atol=2e-3, rtol=2e-3), "collapsed mismatch"

    # 2) Fused 4-layer f32 path (exact layer-by-layer semantics).
    out_f = jax.block_until_ready(
        generator_forward(x, params, use_bf16=False))
    assert jnp.allclose(out_f, ref, atol=1e-5, rtol=1e-5), "f32 fused mismatch"

    # 3) Fused 4-layer bf16-operand path (f32 accumulation); use this in
    #    production when running the non-collapsed, compute-bound path.
    out_b = jax.block_until_ready(
        generator_forward(x, params, use_bf16=True))
    assert jnp.allclose(out_b, ref, atol=3e-2, rtol=3e-2), "bf16 mismatch"

    print("KERNEL_OK")
</pallas_src>

<mosaic_0001>
module attributes {stable_mosaic.version = 11 : i64} {
  func.func @kernel(%arg0: i32, %arg1: memref<8x128xf32, #tpu.memory_space<vmem>>, %arg2: memref<128x256xf32, #tpu.memory_space<vmem>>, %arg3: memref<1x256xf32, #tpu.memory_space<vmem>>, %arg4: memref<8x256xf32, #tpu.memory_space<vmem>>) attributes {dimension_semantics = [#tpu.dimension_semantics<parallel>], iteration_bounds = array<i64: 2>, scalar_prefetch = 0 : i64, scratch_operands = 0 : i64, tpu.core_type = #tpu.core_type<tc>, window_params = [{transform_indices = @transform_0, window_bounds = array<i64: 8, 128>}, {pipeline_mode = #tpu.pipeline_mode<synchronous>, transform_indices = @transform_1, window_bounds = array<i64: 128, 256>}, {pipeline_mode = #tpu.pipeline_mode<synchronous>, transform_indices = @transform_2, window_bounds = array<i64: 1, 256>}, {transform_indices = @transform_3, window_bounds = array<i64: 8, 256>}]} {
    %c0 = arith.constant 0 : index
    %c0_0 = arith.constant 0 : index
    %0 = vector.load %arg1[%c0, %c0_0] : memref<8x128xf32, #tpu.memory_space<vmem>>, vector<8x128xf32>
    %c0_1 = arith.constant 0 : index
    %c0_2 = arith.constant 0 : index
    %1 = vector.load %arg2[%c0_1, %c0_2] : memref<128x256xf32, #tpu.memory_space<vmem>>, vector<128x256xf32>
    %cst = arith.constant dense<0.000000e+00> : vector<8x256xf32>
    %2 = tpu.matmul %0, %1, %cst {dimension_numbers = #tpu.dot_dimension_numbers<[1], [0], [0], [1], [0, 0, 1, 1], [], []>} : vector<8x128xf32>, vector<128x256xf32>, vector<8x256xf32> -> vector<8x256xf32>
    %c0_3 = arith.constant 0 : index
    %c0_4 = arith.constant 0 : index
    %3 = vector.load %arg3[%c0_3, %c0_4] : memref<1x256xf32, #tpu.memory_space<vmem>>, vector<1x256xf32>
    %4 = vector.broadcast %3 : vector<1x256xf32> to vector<8x256xf32>
    %5 = arith.addf %2, %4 : vector<8x256xf32>
    %6 = arith.negf %5 : vector<8x256xf32>
    %7 = math.exp %6 : vector<8x256xf32>
    %cst_5 = arith.constant 1.000000e+00 : f32
    %8 = vector.broadcast %cst_5 : f32 to vector<8x256xf32>
    %9 = arith.addf %8, %7 : vector<8x256xf32>
    %10 = arith.divf %8, %9 : vector<8x256xf32>
    %c0_6 = arith.constant 0 : index
    %c0_7 = arith.constant 0 : index
    %11 = vector.load %arg4[%c0_6, %c0_7] : memref<8x256xf32, #tpu.memory_space<vmem>>, vector<8x256xf32>
    tpu.vector_store %arg4[%c0_6, %c0_7], %10 {strides = array<i32>} : memref<8x256xf32, #tpu.memory_space<vmem>>, vector<8x256xf32>,
    return
  }
  func.func @transform_0(%arg0: i32) -> (i32, i32) {
    %c0_i32 = arith.constant 0 : i32
    %c0_i32_0 = arith.constant 0 : i32
    return %arg0, %c0_i32 : i32, i32
  }
  func.func @transform_1(%arg0: i32) -> (i32, i32) {
    %c0_i32 = arith.constant 0 : i32
    %c0_i32_0 = arith.constant 0 : i32
    %c0_i32_1 = arith.constant 0 : i32
    return %c0_i32, %c0_i32_0 : i32, i32
  }
  func.func @transform_2(%arg0: i32) -> (i32, i32) {
    %c0_i32 = arith.constant 0 : i32
    %c0_i32_0 = arith.constant 0 : i32
    %c0_i32_1 = arith.constant 0 : i32
    return %c0_i32, %c0_i32_0 : i32, i32
  }
  func.func @transform_3(%arg0: i32) -> (i32, i32) {
    %c0_i32 = arith.constant 0 : i32
    %c0_i32_0 = arith.constant 0 : i32
    return %arg0, %c0_i32 : i32, i32
  }
}

</mosaic_0001>

<bundles_post_ra>
// kernel: tpu_custom_call.1
= control target key start
LH: loop header
LB: loop body
LE: loop exit
PB: predicated region body
PF: predicated region fallthrough
CT: control target
= control target key end

     0   :  { %8 = vsyncpa [#allocation3], 0  ;;  %s903_s0 = inlined_call_operand.hbm [shape: f32[16,128], index: 0, kind: input, shape index: {}]   ;;  %s904_s1 = inlined_call_operand.hbm [shape: f32[128,256], index: 1, kind: input, shape index: {}]   ;;  %s905_s2 = inlined_call_operand.vmem [shape: f32[1,256], index: 2, kind: input, shape index: {}]   ;;  %s906_s3 = inlined_call_operand.hbm [shape: f32[16,256], index: 3, kind: output, shape index: {}]  }
   0x1   :  { %10 = vsyncpa [#allocation3 + $0x1], 0 }
   0x2   :  { %11 = vsyncpa [#allocation6], 0 }
   0x3   :  { %12 = vsyncpa [#allocation4], 0 }
   0x4   :  { %14 = vsyncpa [#allocation4 + $0x1], 0  ;;  %s700_s12 = smov 0   ;;  %s702_s13 = smov 0  }
   0x5   :  { %s704_s14 = smov 0   ;;  %s706_s15 = smov 0  }
   0x6 LB: > { %s721_s16 = sadd.s32 4294967295, %s672_s15   ;;  %s426_s17 = sadd.s32 4294967294, %s672_s15   ;;  %s672_s15 = sphi %s706_s15, %s926_s15   ;;  %s668_s14 = sphi %s704_s14, %s925_s14   ;;  %s664_s13 = sphi %s702_s13, %s924_s13   ;;  %s660_s12 = sphi %s700_s12, %s923_s12  }
   0x7   : > { %p40_p0 = scmp.ne.s32.totalorder %s664_s13, %s660_s12  ;;  %p907_p1 = scmp.eq.s32.totalorder %s721_s16, 0 }
   0x8   : > { %p112_p3 = scmp.eq.s32.totalorder %s426_s17, 1  ;;  %p427_p5 = scmp.ge.s32.totalorder %s672_s15, 1 }
   0x9   : > { %p730_p4 = por %p907_p1, %p40_p0  ;;  %p119_p7 = scmp.lt.s32.totalorder %s672_s15, 3 }
   0xa   : > { %p735_p6 = por %p112_p3, %p40_p0  ;;  %s674_s21 = smov [#allocation5]  }
   0xb   : > { %s910_s18 = scalar_select %p730_p4, 1, 0 }
   0xc   : > { %s911_s19 = scalar_select %p735_p6, 1, 0 }
   0xd   : > { %p740_p8 = pnand %p427_p5, %p119_p7  ;;  %s131_s22 = sshll.u32 %s674_s21, 4  ;;  %s744_s22 = int_to_ptr.vmem [resolvable:$true] %s131_s22 }
   0xe   : > { %s756_s24 = sadd.s32 1, %s672_s15   ;;  %s27_s25 = sadd.s32 1, %s668_s14 }
   0xf   : > { %s912_s20 = scalar_select %p740_p8, 1, 0 }
  0x10   : > { %p484_p9 = pneg %p740_p8  ;;  %s24_s26 = ssub.s32 %s672_s15, %s756_s24 }
  0x11   : > { %s544_s29 = scalar_lea.hbm %s904_s1, 4096 }
  0x12   : > { %p751_p11 = pnand %p484_p9, %p907_p1  ;;  %p545_p12 = scmp.ne.s32.totalorder %s904_s1, %s544_s29 }
  0x13   : > { %p551_p5 = scmp.lt.u32.totalorder %s544_s29, %s904_s1 }
  0x14   : > { %p546_p13 = pneg %p751_p11 }
  0x16   : > { %p547_p0 = pnand %p546_p13, %p545_p12 }
  0x18   : > { %p548_p3 = pneg %p547_p0 }
  0x1a   : > { %p553_p7 = pnand %p551_p5, %p548_p3 }
  0x1c   : > { %556 = shalt.err (!%p553_p7)
}
  0x1d   : > { %s557_s7 = scalar_lea.vmem %s744_s22, 4096  ;;  %p565_p2 = scmp.lt.s32.totalorder %s744_s22, %s744_s22 }
  0x1e   : > { %p558_p9 = scmp.ne.s32.totalorder %s744_s22, %s557_s7  ;;  %p566_p6 = scmp.lt.s32.totalorder %s557_s7, %s557_s7 }
  0x20   : > { %p560_p10 = pnand %p558_p9, %p546_p13  ;;  %p567_p4 = por %p566_p6, %p565_p2 }
  0x22   : > { %p561_p1 = pneg %p560_p10 }
  0x24   : > { %p568_p8 = pnand %p567_p4, %p561_p1 }
  0x26   : > { %571 = shalt.err (!%p568_p8)
}
  0x27   : > { %s675_s8 = smov 256   ;;  %s676_s9 = smov 16  }
  0x28   : > { %487 = dma.hbm_to_vmem [thread:$0]  (!%p751_p11), %s904_s1, 4096, %s744_s22, [#allocation6], %s675_s8, %s675_s8, %s676_s9  }
  0x29   : > { %p25_p2 = scmp.eq.s32.totalorder %s24_s26, 0  ;;  %p34_p1 = scmp.ne.s32.totalorder %s668_s14, %s664_s13 }
  0x2a   : > { %p35_p4 = scmp.eq.s32.totalorder %s672_s15, 0  ;;  %p497_p6 = scmp.lt.s32.totalorder %s672_s15, 2 }
  0x2b   : > { %s787_s17 = scalar_select %p25_p2, %s668_s14, %s27_s25  }
  0x2c   : > { %p36_p8 = por %p35_p4, %p34_p1  ;;  %p914_p10 = scmp.eq.s32.totalorder %s721_s16, 1 }
  0x2d   : > { %s148_s27 = sand.u32 1, %s668_s14   ;;  %s431_s28 = sshll.u32 %s672_s15, 7 }
  0x2e   : > { %p791_p12 = por %p914_p10, %p34_p1  ;;  %s430_s29 = sshll.u32 %s148_s27, 3 }
  0x2f   : > { %s800_s4 = scalar_lea.hbm %s903_s0, %s431_s28  ;;  %s152_s22 = scalar_lea.vmem [#allocation2], %s430_s29 }
  0x30   : > { %s159_s25 = sshll.u32 %s152_s22, 4  ;;  %p802_p11 = pnand %p497_p6, %p36_p8  ;;  %s806_s25 = int_to_ptr.vmem [resolvable:$true] %s159_s25 }
  0x31   : > { %s149_s5 = scalar_lea.sflag [#allocation3], %s148_s27  ;;  %s572_s6 = scalar_lea.hbm %s800_s4, 128 }
  0x32   : > { %p573_p13 = scmp.ne.s32.totalorder %s800_s4, %s572_s6  ;;  %p574_p0 = pneg %p802_p11 }
  0x33   : > { %s577_s9 = scalar_lea.hbm %s903_s0, 256  ;;  %p578_p7 = scmp.lt.u32.totalorder %s800_s4, %s903_s0 }
  0x34   : > { %p575_p3 = pnand %p574_p0, %p573_p13  ;;  %p579_p9 = scmp.lt.u32.totalorder %s577_s9, %s572_s6 }
  0x35   : > { %p581_p1 = scmp.lt.u32.totalorder %s572_s6, %s800_s4 }
  0x36   : > { %p576_p5 = pneg %p575_p3  ;;  %p580_p2 = por %p579_p9, %p578_p7 }
  0x38   : > { %p582_p4 = por %p581_p1, %p580_p2 }
  0x3a   : > { %p583_p6 = pnand %p582_p4, %p576_p5 }
  0x3c   : > { %586 = shalt.err (!%p583_p6)
}
  0x3d   : > { %s587_s27 = scalar_lea.vmem %s806_s25, 128  ;;  %s677_s28 = smov [#allocation2]  }
  0x3e   : > { %p588_p8 = scmp.ne.s32.totalorder %s806_s25, %s587_s27  ;;  %s592_s29 = sshll.u32 %s677_s28, 4  ;;  %s593_s29 = int_to_ptr.vmem [resolvable:$false] %s592_s29 }
  0x3f   : > { %s594_s23 = scalar_lea.vmem %s593_s29, 256  ;;  %p595_p3 = scmp.lt.s32.totalorder %s806_s25, %s593_s29 }
  0x40   : > { %p590_p10 = pnand %p588_p8, %p574_p0  ;;  %p596_p7 = scmp.lt.s32.totalorder %s594_s23, %s587_s27 }
  0x42   : > { %p591_p13 = pneg %p590_p10  ;;  %p597_p9 = por %p596_p7, %p595_p3 }
  0x44   : > { %p598_p2 = pnand %p597_p9, %p591_p13 }
  0x46   : > { %601 = shalt.err (!%p598_p2)
}
  0x47   : > { %491 = dma.hbm_to_vmem [thread:$0]  (!%p802_p11), %s800_s4, 128, %s806_s25, %s149_s5  }
  0x48   : > { %p917_p5 = scmp.ne.s32.totalorder %s912_s20, 0 }
  0x49   : > { %s836_s30 = sand.u32 (!%p917_p5), 1, %s664_s13   ;;  %p918_p0 = scmp.ne.s32.totalorder (!%p917_p5), %s910_s18, 0 }
  0x4a   : > { %168 = sbr.rel (%p917_p5) target bundleno = 375 (0x177), region = 32  ;;  %s433_s22 = sshll.u32 (!%p917_p5), %s836_s30, 3 }
  0x4b   : > { %s171_s6 = scalar_lea.sflag (!%p917_p5), [#allocation3], %s836_s30  ;;  %s840_s7 = scalar_lea.vmem (!%p917_p5), [#allocation2], %s433_s22 }
  0x51   : > { %647 = dma.done.wait (%p918_p0), %s171_s6, 128  }
  0x52   : > { %649 = vsyncadd (%p918_p0), %s171_s6, 4294967168  ;;  %p919_p11 = scmp.eq.s32.totalorder %s721_s16, 0 }
  0x54   : > { %651 = dma.done.wait (%p919_p11), [#allocation6], 4096   ;;  %p920_p1 = pmov %p919_p11 }
  0x55   : > { %v678_v0 = vmov 0.0   ;;  %v203_v1 = vld [vmem:[#allocation5 + $0x8] sm:$0xff]  ;;  %v205_v2 = vld [vmem:[#allocation5 + $0x18] sm:$0xff]  ;;  %v202_v3 = vld [vmem:[#allocation5] sm:$0xff]  ;;  %v236_v50 = vlaneseq  ;;  %s435_s4 = sshll.u32 %s836_s30, 4  ;;  %s443_s25 = sshll.u32 %s721_s16, 8 }
  0x56   : > { %653 = vsyncadd (%p920_p1), [#allocation6], 4294963200  ;;  %310 = vmatprep.mubr.f32.mxu0 %v678_v0  ;;  %v444_v4 = vpack.c.bf16 %v205_v2, %v203_v1  ;;  %v204_v5 = vld [vmem:[#allocation5 + $0x10] sm:$0xff]  ;;  %v207_v6 = vld [vmem:[#allocation5 + $0x28] sm:$0xff]  ;;  %s200_s26 = scalar_lea.vmem [#allocation7], %s435_s4  ;;  %s859_s10 = scalar_lea.hbm %s906_s3, %s443_s25 }
  0x57   : > { %v209_v7 = vld [vmem:[#allocation5 + $0x38] sm:$0xff]  ;;  %v446_v8 = vpack.c.bf16 %v204_v5, %v202_v3  ;;  %v206_v10 = vld [vmem:[#allocation5 + $0x20] sm:$0xff]  ;;  %v208_v11 = vld [vmem:[#allocation5 + $0x30] sm:$0xff]  ;;  %v237_v51 = vshrl.u32 %v236_v50, 7  ;;  %s346_s5 = sshll.u32 %s200_s26, 4  ;;  %s332_s11 = scalar_lea.sflag [#allocation4], %s836_s30  ;;  %s861_s5 = int_to_ptr.vmem [resolvable:$true] %s346_s5 }
  0x58   : > { %v448_v9 = vpack.c.bf16 %v209_v7, %v207_v6  ;;  %v211_v12 = vld [vmem:[#allocation5 + $0x48] sm:$0xff]  ;;  %445 = vmatprep.subr.bf16.mxu0 %v444_v4  ;;  %v213_v13 = vld [vmem:[#allocation5 + $0x58] sm:$0xff]  ;;  %v450_v14 = vpack.c.bf16 %v208_v11, %v206_v10  ;;  %v210_v16 = vld [vmem:[#allocation5 + $0x40] sm:$0xff]  ;;  %s602_s27 = scalar_lea.vmem %s861_s5, 256  ;;  %s679_s16 = smov [#allocation7]  }
  0x59   : > { %447 = vmatpush1.bf16.msra.mxu0 %v446_v8  ;;  %v452_v15 = vpack.c.bf16 %v213_v13, %v211_v12  ;;  %v212_v17 = vld [vmem:[#allocation5 + $0x50] sm:$0xff]  ;;  %v215_v18 = vld [vmem:[#allocation5 + $0x68] sm:$0xff]  ;;  %v217_v19 = vld [vmem:[#allocation5 + $0x78] sm:$0xff]  ;;  %v238_v52 = vsub.s32 0, %v237_v51  ;;  %v242_v54 = vsub.s32 1, %v237_v51  ;;  %p603_p4 = scmp.ne.s32.totalorder %s861_s5, %s602_s27  ;;  %s606_s28 = sshll.u32 %s679_s16, 4  ;;  %s607_s28 = int_to_ptr.vmem [resolvable:$false] %s606_s28 }
  0x5a   : > { %449 = vmatprep.subr.bf16.mxu0 %v448_v9  ;;  %v454_v20 = vpack.c.bf16 %v212_v17, %v210_v16  ;;  %v456_v21 = vpack.c.bf16 %v217_v19, %v215_v18  ;;  %v214_v22 = vld [vmem:[#allocation5 + $0x60] sm:$0xff]  ;;  %v216_v23 = vld [vmem:[#allocation5 + $0x70] sm:$0xff]  ;;  %v219_v24 = vld [vmem:[#allocation5 + $0x88] sm:$0xff]  ;;  %s608_s29 = scalar_lea.vmem %s607_s28, 512  ;;  %p609_p10 = scmp.lt.s32.totalorder %s861_s5, %s607_s28 }
  0x5b   : > { %v221_v25 = vld [vmem:[#allocation5 + $0x98] sm:$0xff]  ;;  %v458_v26 = vpack.c.bf16 %v216_v23, %v214_v22  ;;  %v218_v28 = vld [vmem:[#allocation5 + $0x80] sm:$0xff]  ;;  %v220_v29 = vld [vmem:[#allocation5 + $0x90] sm:$0xff]  ;;  %p604_p6 = pnand %p603_p4, %p791_p12  ;;  %p610_p13 = scmp.lt.s32.totalorder %s608_s29, %s602_s27 }
  0x5c   : > { %v460_v27 = vpack.c.bf16 %v221_v25, %v219_v24  ;;  %v223_v30 = vld [vmem:[#allocation5 + $0xa8] sm:$0xff]  ;;  %v225_v31 = vld [vmem:[#allocation5 + $0xb8] sm:$0xff]  ;;  %v462_v32 = vpack.c.bf16 %v220_v29, %v218_v28  ;;  %v222_v34 = vld [vmem:[#allocation5 + $0xa0] sm:$0xff] }
  0x5d   : > { %451 = vmatpush1.bf16.msra.mxu0 %v450_v14  ;;  %v464_v33 = vpack.c.bf16 %v225_v31, %v223_v30  ;;  %v224_v35 = vld [vmem:[#allocation5 + $0xb0] sm:$0xff]  ;;  %v227_v36 = vld [vmem:[#allocation5 + $0xc8] sm:$0xff]  ;;  %v229_v37 = vld [vmem:[#allocation5 + $0xd8] sm:$0xff]  ;;  %p605_p8 = pneg %p604_p6  ;;  %p611_p3 = por %p610_p13, %p609_p10 }
  0x5e   : > { %453 = vmatprep.subr.bf16.mxu0 %v452_v15  ;;  %v466_v38 = vpack.c.bf16 %v224_v35, %v222_v34  ;;  %v468_v39 = vpack.c.bf16 %v229_v37, %v227_v36  ;;  %v226_v40 = vld [vmem:[#allocation5 + $0xc0] sm:$0xff]  ;;  %v228_v41 = vld [vmem:[#allocation5 + $0xd0] sm:$0xff]  ;;  %v231_v42 = vld [vmem:[#allocation5 + $0xe8] sm:$0xff] }
  0x5f   : > { %v233_v43 = vld [vmem:[#allocation5 + $0xf8] sm:$0xff]  ;;  %v470_v44 = vpack.c.bf16 %v228_v41, %v226_v40  ;;  %v230_v46 = vld [vmem:[#allocation5 + $0xe0] sm:$0xff]  ;;  %v232_v47 = vld [vmem:[#allocation5 + $0xf0] sm:$0xff]  ;;  %p612_p7 = pnand %p611_p3, %p605_p8 }
  0x60   : > { %v472_v45 = vpack.c.bf16 %v233_v43, %v231_v42  ;;  %v474_v48 = vpack.c.bf16 %v232_v47, %v230_v46  ;;  %v201_v49 = vld [vmem:[%s840_s7] sm:$0xff] }
  0x61   : > { %455 = vmatpush1.bf16.msra.mxu0 %v454_v20  ;;  %v234_v53 = vld [vmem:[%s905_s2] sm:$0x3] }
  0x62   : > { %457 = vmatprep.subr.bf16.mxu0 %v456_v21  ;;  %v239_v55 = vrot.slane %v234_v53, %v238_v52  ;;  %v243_v56 = vrot.slane %v234_v53, %v242_v54 }
  0x65   : > { %459 = vmatpush1.bf16.msra.mxu0 %v458_v26 }
  0x66   : > { %461 = vmatprep.subr.bf16.mxu0 %v460_v27 }
  0x69   : > { %463 = vmatpush1.bf16.msra.mxu0 %v462_v32 }
  0x6a   : > { %465 = vmatprep.subr.bf16.mxu0 %v464_v33 }
  0x6d   : > { %467 = vmatpush1.bf16.msra.mxu0 %v466_v38 }
  0x6e   : > { %469 = vmatprep.subr.bf16.mxu0 %v468_v39 }
  0x71   : > { %471 = vmatpush1.bf16.msra.mxu0 %v470_v44 }
  0x72   : > { %473 = vmatprep.subr.bf16.mxu0 %v472_v45 }
  0x75   : > { %475 = vmatpush1.bf16.msra.mxu0 %v474_v48 }
  0x78   : > { %311 = vmatmul.mubr.f32.vlgmr.msra.gmra.mrb[0].mxu0 %v201_v49 }
 0x14b   : > { %v312_v57 = vpop.f32.mrb[0].mxu0 }
 0x14c   : > { %v313_v58 = vadd.f32 %v312_v57, %v239_v55  ;;  %v314_v59 = vpop.f32.mrb[1].mxu0 }
 0x14d   : > { %v315_v60 = vadd.f32 %v314_v59, %v243_v56 }
 0x14e   : > { %v436_v61 = vmul.f32 -1.442695, %v313_v58 }
 0x14f   : > { %v437_v62 = vmul.f32 -1.442695, %v315_v60 }
 0x150   : > { %536 = vpow2.f32 %v436_v61 }
 0x151   : > { %538 = vpow2.f32 %v437_v62 }
 0x15a   : > { %v537_v63 = vpop.eup %536 }
 0x15b   : > { %v539_v0 = vpop.eup %538  ;;  %v323_v1 = vadd.f32 1.0, %v537_v63 }
 0x15c   : > { %v324_v2 = vadd.f32 1.0, %v539_v0 }
 0x15d   : > { %540 = vrcp.f32 %v323_v1 }
 0x15e   : > { %542 = vrcp.f32 %v324_v2 }
 0x167   : > { %v541_v3 = vpop.eup %540 }
 0x168   : > { %v543_v4 = vpop.eup %542  ;;  %329 = vst [vmem:[%s200_s26] sm:$0xff] %v541_v3 }
 0x169   : > { %330 = vst [vmem:[%s200_s26 + $0x8] sm:$0xff] %v543_v4 }
 0x16a   : > { %615 = shalt.err (!%p612_p7)
}
 0x16b   : > { %s616_s23 = scalar_lea.hbm %s859_s10, 256  ;;  %s620_s6 = scalar_lea.hbm %s906_s3, 512 }
 0x16c   : > { %p617_p9 = scmp.ne.s32.totalorder %s859_s10, %s616_s23  ;;  %p621_p0 = scmp.lt.u32.totalorder %s859_s10, %s906_s3 }
 0x16d   : > { %p622_p11 = scmp.lt.u32.totalorder %s620_s6, %s616_s23  ;;  %p624_p4 = scmp.lt.u32.totalorder %s616_s23, %s859_s10 }
 0x16e   : > { %p618_p2 = pnand %p617_p9, %p791_p12 }
 0x16f   : > { %p623_p1 = por %p622_p11, %p621_p0 }
 0x170   : > { %p619_p5 = pneg %p618_p2 }
 0x171   : > { %p625_p6 = por %p624_p4, %p623_p1 }
 0x173   : > { %p626_p8 = pnand %p625_p6, %p619_p5 }
 0x175   : > { %629 = shalt.err (!%p626_p8)
}
 0x176   : > { %482 = dma.vmem_to_hbm [thread:$0]  (%p791_p12), %s861_s5, 256, %s859_s10, %s332_s11  }
 0x177 PF: > { %s358_s20 = sand.u32 1, %s660_s12   ;;  %p921_p10 = scmp.ne.s32.totalorder %s911_s19, 0 }
 0x178   : > { %p922_p13 = scmp.ge.s32.totalorder %s672_s15, 2  ;;  %s359_s4 = scalar_lea.sflag [#allocation4], %s358_s20 }
 0x17a   : > { %p493_p3 = pnand %p922_p13, %p921_p10 }
 0x17c   : > { %655 = dma.done.wait (!%p493_p3), %s359_s4, 256  }
 0x17d   : > { %657 = vsyncadd (!%p493_p3), %s359_s4, 4294967040  ;;  %p17_p7 = scmp.ge.s32.totalorder %s756_s24, 4   ;;  %s923_s12 = smov %s664_s13 }
 0x17e   : > { %s924_s13 = smov %s668_s14  ;;  %s925_s14 = smov %s787_s17 }
 0x17f   : > { %s926_s15 = smov %s756_s24  ;;  %19 = sbr.rel (!%p17_p7) target bundleno = 6 (0x6), region = 81 }
 0x186   :  { %364 = vsyncpa [#allocation3], 1 }
 0x187   :  { %366 = vsyncpa [#allocation3 + $0x1], 1 }
 0x188   :  { %367 = vsyncpa [#allocation6], 1 }
 0x189   :  { %368 = vsyncpa [#allocation4], 1 }
 0x18a   :  { %370 = vsyncpa [#allocation4 + $0x1], 1 }

</bundles_post_ra>
